<compile_context>
chip_gen: v7x
topology: tpu7x:2x2x1
jax: 0.10.0
libtpu: 0.0.40
codegen_flags: <defaults>
</compile_context>

<pallas_src>
import functools
import math
import re

import jax
import jax.numpy as jnp
from jax import lax
from jax.experimental import pallas as pl
from jax.experimental.pallas import tpu as pltpu


def _round_up(x, m):
    return (x + m - 1) // m * m


def _cdiv(a, b):
    return -(-a // b)


def _tpu_generation():
    """Best-effort TPU generation from device_kind ('TPU v5e'->5, 'TPU v6e'->6, 'TPU7x'->7)."""
    try:
        kind = jax.devices()[0].device_kind
    except Exception:
        return 0
    m = re.search(r"(\d+)", kind)
    return int(m.group(1)) if m else 0


def _static_pow(x, p):
    """x ** p for a static Python exponent, x > 0. Integer p uses VALU multiplies only."""
    p = float(p)
    if p == 1.0:
        return x
    if p.is_integer() and 2.0 <= p <= 16.0:
        n = int(p)
        result = None
        base = x
        while n:
            if n & 1:
                result = base if result is None else result * base
            n >>= 1
            if n:
                base = base * base
        return result
    # Non-integer static exponent: still a compile-time constant, but uses the EUP.
    return jnp.exp(jnp.asarray(p, x.dtype) * jnp.log(x))


def _clamp_pow(x_ref, p_ref, *, eps, p_static, compute_dtype):
    """clamp(x, eps) ** p in `compute_dtype` (bf16 on v6e/v7x for bf16 inputs)."""
    x = x_ref[...].astype(compute_dtype)
    x = jnp.maximum(x, jnp.asarray(eps, compute_dtype))
    if p_static is not None:
        return _static_pow(x, p_static)
    pc = p_ref[0].astype(compute_dtype)
    return jnp.exp(pc * jnp.log(x))            # x > 0 after clamp


def _finalize(s_f32, p_ref, *, log_s_total, p_static, out_dtype):
    """mean ** (1/p) == exp((log(sum) - log(S)) / p); one exp/log pair per output row."""
    if p_static is not None:
        inv_p = 1.0 / float(p_static)
    else:
        inv_p = 1.0 / p_ref[0]
    y = jnp.exp((jnp.log(s_f32) - log_s_total) * inv_p)
    return y.astype(out_dtype)


# --------------------------------------------------------------------------------------
# Kernel variant A: whole reduction axis in one block (grid_s == 1). No scratch, no mask.
# --------------------------------------------------------------------------------------
def _gem_single_kernel(p_ref, x_ref, o_ref, *, eps, log_s_total, p_static, compute_dtype):
    xp = _clamp_pow(x_ref, p_ref, eps=eps, p_static=p_static, compute_dtype=compute_dtype)
    s = jnp.sum(xp.astype(jnp.float32), axis=-1, keepdims=True)
    o_ref[...] = _finalize(s, p_ref, log_s_total=log_s_total, p_static=p_static,
                           out_dtype=o_ref.dtype)


# --------------------------------------------------------------------------------------
# Kernel variant B: tiled reduction (grid_s > 1). Wide (tr, 128) f32 accumulator;
# lane-group fold with VALU adds per step; mask only on the last S step.
# --------------------------------------------------------------------------------------
def _gem_tiled_kernel(p_ref, x_ref, o_ref, acc_ref, *, eps, s_total, log_s_total,
                      ts, needs_mask, p_static, compute_dtype):
    k = pl.program_id(1)
    last = pl.num_programs(1) - 1

    @pl.when(k == 0)
    def _():
        acc_ref[...] = jnp.zeros_like(acc_ref)

    xp = _clamp_pow(x_ref, p_ref, eps=eps, p_static=p_static, compute_dtype=compute_dtype)

    def _fold(v):
        # Fold ts lanes into 128 lanes with unmasked, lane-aligned VALU adds (f32 accumulate).
        part = v[:, 0:128].astype(jnp.float32)
        for j in range(1, ts // 128):
            part = part + v[:, j * 128:(j + 1) * 128].astype(jnp.float32)
        return part

    if needs_mask:
        @pl.when(k != last)
        def _():
            acc_ref[...] += _fold(xp)

        @pl.when(k == last)
        def _():
            # Only the last S block carries garbage lanes; select (not multiply) AFTER
            # the pow so Inf/NaN in dead lanes cannot leak into the accumulator.
            col = k * ts + lax.broadcasted_iota(jnp.int32, xp.shape, 1)
            acc_ref[...] += _fold(jnp.where(col < s_total, xp, 0.0))
    else:
        acc_ref[...] += _fold(xp)

    @pl.when(k == last)
    def _():
        s = jnp.sum(acc_ref[...], axis=-1, keepdims=True)   # single XLU reduce per row tile
        o_ref[...] = _finalize(s, p_ref, log_s_total=log_s_total, p_static=p_static,
                               out_dtype=o_ref.dtype)


# --------------------------------------------------------------------------------------
# Wrapper
# --------------------------------------------------------------------------------------
def gem_forward(x, p, eps=1e-6, *, p_static=None, target_tile_elems=None):
    """GeM pooling. x: (N, C, D, H, W); p: learnable exponent, shape (1,).

    If `p_static` is given it must equal the value in `p`; the kernel then replaces the
    per-element exp/log pow with static multiplies (big win on v6e/v7x).
    Returns (N, C) in x.dtype.
    """
    N, C, D, H, W = x.shape
    NC = N * C
    S = D * H * W
    itemsize = jnp.dtype(x.dtype).itemsize
    row_align = max(8, 32 // itemsize)             # 8 for f32, 16 for bf16

    x2 = x.reshape(NC, S)                          # contiguous reshape; keeps HBM dtype
    p_arr = jnp.asarray(p, jnp.float32).reshape(1)

    # bf16 EUP/VPU math only exists on v6e / v7x; elsewhere compute in f32.
    gen = _tpu_generation()
    if x.dtype == jnp.bfloat16 and gen >= 6:
        compute_dtype = jnp.bfloat16
    else:
        compute_dtype = jnp.float32

    # ---- VMEM budget gated on the actual chip (64 MiB on v7x, 128 MiB on v5e/v6e) ----
    try:
        phys_vmem = pltpu.get_tpu_info().vmem_capacity_bytes
    except Exception:                              # conservative v7x-sized fallback
        phys_vmem = 64 * 1024 * 1024
    vmem_limit = int(max(32 << 20, min(phys_vmem - (16 << 20), 96 << 20)))

    # Tile size derived from VMEM: double-buffered input + f32-ish compute intermediates.
    if target_tile_elems is None:
        bytes_per_elem = 2 * itemsize + 12
        target_tile_elems = max(64 * 1024,
                                min(2 * 1024 * 1024, (vmem_limit // 3) // bytes_per_elem))

    rows_budget = target_tile_elems // max(S, 1)
    min_rows = NC if NC <= row_align else row_align

    if rows_budget >= min_rows:
        # ---- Variant A: whole reduction axis in one lane block ----
        ts = S
        if NC <= row_align:
            tr = NC                                # full-extent row block
        else:
            # At least 2 row blocks so both v7x TensorCores get work on the parallel axis.
            half_rows = _round_up(_cdiv(NC, 2), row_align)
            rows_cap = (rows_budget // row_align) * row_align
            tr = max(row_align, min(rows_cap, half_rows))
        grid_rows = _cdiv(NC, tr)

        kernel = functools.partial(
            _gem_single_kernel, eps=float(eps), log_s_total=float(math.log(S)),
            p_static=p_static, compute_dtype=compute_dtype)

        out = pl.pallas_call(
            kernel,
            out_shape=jax.ShapeDtypeStruct((NC, 1), x.dtype),
            grid_spec=pltpu.PrefetchScalarGridSpec(
                num_scalar_prefetch=0,
                grid=(grid_rows,),
                in_specs=[
                    pl.BlockSpec(memory_space=pltpu.MemorySpace.SMEM),       # p (scalar)
                    pl.BlockSpec((tr, S), lambda i: (i, 0)),                 # x tiles
                ],
                out_specs=pl.BlockSpec((tr, 1), lambda i: (i, 0)),
            ),
            compiler_params=pltpu.CompilerParams(
                dimension_semantics=("parallel",),
                vmem_limit_bytes=vmem_limit,
            ),
        )(p_arr, x2)
    else:
        # ---- Variant B: also tile the (innermost, "arbitrary") reduction axis ----
        tr = NC if NC <= row_align else row_align
        ts = max(128, (target_tile_elems // max(tr, 1)) // 128 * 128)
        ts = min(ts, _round_up(S, 128))
        grid_s = _cdiv(S, ts)
        grid_rows = _cdiv(NC, tr)
        needs_mask = (grid_s * ts) != S

        kernel = functools.partial(
            _gem_tiled_kernel, eps=float(eps), s_total=S,
            log_s_total=float(math.log(S)), ts=ts, needs_mask=needs_mask,
            p_static=p_static, compute_dtype=compute_dtype)

        out = pl.pallas_call(
            kernel,
            out_shape=jax.ShapeDtypeStruct((NC, 1), x.dtype),
            grid_spec=pltpu.PrefetchScalarGridSpec(
                num_scalar_prefetch=0,
                grid=(grid_rows, grid_s),
                in_specs=[
                    pl.BlockSpec(memory_space=pltpu.MemorySpace.SMEM),       # p (scalar)
                    pl.BlockSpec((tr, ts), lambda i, k: (i, k)),             # x tiles
                ],
                out_specs=pl.BlockSpec((tr, 1), lambda i, k: (i, 0)),
                scratch_shapes=[pltpu.VMEM((tr, 128), jnp.float32)],         # wide accumulator
            ),
            compiler_params=pltpu.CompilerParams(
                dimension_semantics=("parallel", "arbitrary"),
                vmem_limit_bytes=vmem_limit,
            ),
        )(p_arr, x2)

    return out.reshape(N, C)                       # nn.Flatten(1)


def _gem_ref(x, p, eps):
    xf = x.astype(jnp.float32)
    m = jnp.mean(jnp.maximum(xf, eps) ** p[0], axis=(2, 3, 4))
    return m ** (1.0 / p[0])


if __name__ == "__main__":
    key = jax.random.PRNGKey(0)
    eps = 1e-6
    p = jnp.ones((1,), dtype=jnp.float32) * 3.0    # nn.Parameter(torch.ones(1) * 3)

    k1, k2, k3 = jax.random.split(key, 3)

    # 1) Canonical small shape, f32, static-p fast path (p=3 -> two VALU multiplies).
    x1 = jax.random.uniform(k1, (2, 4, 4, 8, 8), dtype=jnp.float32)
    y1 = gem_forward(x1, p, eps, p_static=3.0)
    jax.block_until_ready(y1)
    assert y1.shape == (2, 4)
    assert jnp.allclose(y1, _gem_ref(x1, p, eps), rtol=1e-5, atol=1e-5)

    # 2) Odd row / lane extents: no wrapper-side padding; full-extent edge blocks.
    x2 = jax.random.uniform(k2, (1, 3, 2, 5, 7), dtype=jnp.float32)
    y2 = gem_forward(x2, p, eps, p_static=3.0)
    jax.block_until_ready(y2)
    assert y2.shape == (1, 3)
    assert jnp.allclose(y2, _gem_ref(x2, p, eps), rtol=1e-5, atol=1e-5)

    # 3) bf16 activations with dynamic p (exp/log path; bf16 EUP math on v6e/v7x).
    x3 = x1.astype(jnp.bfloat16)
    y3 = gem_forward(x3, p, eps)
    jax.block_until_ready(y3)
    assert y3.shape == (2, 4) and y3.dtype == jnp.bfloat16
    assert jnp.allclose(y3.astype(jnp.float32), _gem_ref(x3, p, eps),
                        rtol=2e-2, atol=2e-2)

    # 4) Force the tiled-reduction path (grid_s > 1, masked final S block, wide accumulator,
    #    multiple parallel row blocks) with a small artificial tile budget.
    x4 = jax.random.uniform(k3, (1, 16, 4, 25, 40), dtype=jnp.float32)
    y4 = gem_forward(x4, p, eps, target_tile_elems=8 * 1024)
    jax.block_until_ready(y4)
    assert y4.shape == (1, 16)
    assert jnp.allclose(y4, _gem_ref(x4, p, eps), rtol=1e-4, atol=1e-4)

    print("KERNEL_OK")
</pallas_src>

<mosaic_0001>
module attributes {stable_mosaic.version = 11 : i64} {
  func.func @_gem_single_kernel(%arg0: i32, %arg1: memref<1xf32, #tpu.memory_space<smem>>, %arg2: memref<8x256xf32, #tpu.memory_space<vmem>>, %arg3: memref<8x1xf32, #tpu.memory_space<vmem>>) attributes {dimension_semantics = [#tpu.dimension_semantics<parallel>], iteration_bounds = array<i64: 1>, scalar_prefetch = 0 : i64, scratch_operands = 0 : i64, tpu.core_type = #tpu.core_type<tc>, window_params = [{transform_indices = @transform_0, window_bounds = array<i64: 1>}, {transform_indices = @transform_1, window_bounds = array<i64: 8, 256>}, {transform_indices = @transform_2, window_bounds = array<i64: 8, 1>}]} {
    %c0 = arith.constant 0 : index
    %c0_0 = arith.constant 0 : index
    %0 = vector.load %arg2[%c0, %c0_0] : memref<8x256xf32, #tpu.memory_space<vmem>>, vector<8x256xf32>
    %cst = arith.constant 9.99999997E-7 : f32
    %1 = vector.broadcast %cst : f32 to vector<8x256xf32>
    %2 = arith.maximumf %0, %1 : vector<8x256xf32>
    %3 = arith.mulf %2, %2 : vector<8x256xf32>
    %4 = arith.mulf %2, %3 : vector<8x256xf32>
    %cst_1 = arith.constant dense<0.000000e+00> : vector<8xf32>
    %5 = vector.multi_reduction <add>, %4, %cst_1 [1] : vector<8x256xf32> to vector<8xf32>
    %6 = vector.shape_cast %5 : vector<8xf32> to vector<8x1xf32>
    %7 = math.log %6 : vector<8x1xf32>
    %cst_2 = arith.constant 5.54517746 : f32
    %8 = vector.broadcast %cst_2 : f32 to vector<8x1xf32>
    %9 = arith.subf %7, %8 : vector<8x1xf32>
    %cst_3 = arith.constant 0.333333343 : f32
    %10 = vector.broadcast %cst_3 : f32 to vector<8x1xf32>
    %11 = arith.mulf %9, %10 : vector<8x1xf32>
    %12 = math.exp %11 : vector<8x1xf32>
    %c0_4 = arith.constant 0 : index
    %c0_5 = arith.constant 0 : index
    %13 = vector.load %arg3[%c0_4, %c0_5] : memref<8x1xf32, #tpu.memory_space<vmem>>, vector<8x1xf32>
    tpu.vector_store %arg3[%c0_4, %c0_5], %12 {strides = array<i32>} : memref<8x1xf32, #tpu.memory_space<vmem>>, vector<8x1xf32>,
    return
  }
  func.func @transform_0(%arg0: i32) -> i32 {
    %c0_i32 = arith.constant 0 : i32
    %c0_i32_0 = arith.constant 0 : i32
    return %c0_i32 : i32
  }
  func.func @transform_1(%arg0: i32) -> (i32, i32) {
    %c0_i32 = arith.constant 0 : i32
    %c0_i32_0 = arith.constant 0 : i32
    return %arg0, %c0_i32 : i32, i32
  }
  func.func @transform_2(%arg0: i32) -> (i32, i32) {
    %c0_i32 = arith.constant 0 : i32
    %c0_i32_0 = arith.constant 0 : i32
    return %arg0, %c0_i32 : i32, i32
  }
}

</mosaic_0001>

<bundles_post_ra>
// kernel: tpu_custom_call.1
= control target key start
LH: loop header
LB: loop body
LE: loop exit
PB: predicated region body
PF: predicated region fallthrough
CT: control target
= control target key end

     0   :  { %8 = vsyncpa [#allocation4], 0  ;;  %s78_s9 = smov [#allocation3]   ;;  %s109_s0 = inlined_call_operand.<no memory space> [shape: f32[1], index: 0, kind: input, shape index: {}]   ;;  %s110_s1 = inlined_call_operand.hbm [shape: f32[8,256], index: 1, kind: input, shape index: {}]   ;;  %s111_s2 = inlined_call_operand.vmem [shape: f32[8,1], index: 2, kind: output, shape index: {}]  }
   0x1   :  { %s17_s10 = sshll.u32 %s78_s9, 4  ;;  %s54_s13 = scalar_lea.hbm %s110_s1, 256  ;;  %s18_s10 = int_to_ptr.vmem [resolvable:$true] %s17_s10 }
   0x2   :  { %p55_p0 = scmp.ne.s32.totalorder %s110_s1, %s54_s13  ;;  %p58_p1 = scmp.lt.u32.totalorder %s54_s13, %s110_s1 }
   0x4   :  { %p60_p2 = pnand %p58_p1, %p55_p0 }
   0x6   :  { %63 = shalt.err (!%p60_p2)
}
   0x7   :  { %s64_s17 = scalar_lea.vmem %s18_s10, 256  ;;  %p69_p4 = scmp.lt.s32.totalorder %s18_s10, %s18_s10 }
   0x8   :  { %p65_p3 = scmp.ne.s32.totalorder %s18_s10, %s64_s17  ;;  %p70_p5 = scmp.lt.s32.totalorder %s64_s17, %s64_s17 }
   0xa   :  { %p71_p6 = por %p70_p5, %p69_p4 }
   0xc   :  { %p72_p7 = pnand %p71_p6, %p65_p3 }
   0xe   :  { %75 = shalt.err (!%p72_p7)
}
   0xf   :  { %20 = dma.hbm_to_vmem [thread:$0]  %s110_s1, 256, %s18_s10, [#allocation4]  }
  0x10   :  { %76 = dma.done.wait [#allocation4], 256  }
  0x11   :  { %77 = vsyncadd [#allocation4], 4294967040  ;;  %v24_v0 = vld [vmem:[#allocation3] sm:$0xff]  ;;  %v25_v1 = vld [vmem:[#allocation3 + $0x8] sm:$0xff]  ;;  %vm41_vm0 = vcmask 7168  }
  0x12   :  { %v26_v2 = vmax.f32 %v24_v0, 1e-06  ;;  %v27_v3 = vmax.f32 %v25_v1, 1e-06 }
  0x14   :  { %v28_v4 = vmul.f32 %v26_v2, %v26_v2  ;;  %v29_v5 = vmul.f32 %v27_v3, %v27_v3 }
  0x16   :  { %v30_v6 = vmul.f32 %v28_v4, %v26_v2  ;;  %v31_v7 = vmul.f32 %v29_v5, %v27_v3 }
  0x18   :  { %v32_v8 = vadd.f32 %v31_v7, %v30_v6 }
  0x1a   :  { %33 = vadd.xlane.f32.xlu0 %v32_v8 }
  0xa7   :  { %v34_v9 = vpop.xlane.xlu0 %33 }
  0xa8   :  { %50 = vlog2.f32 %v34_v9 }
  0xb2   :  { %v51_v10 = vpop.eup %50 }
  0xb3   :  { %v36_v11 = vmul.f32 0.6931472, %v51_v10 }
  0xb5   :  { %v48_v12 = vadd.f32 -5.5451775, %v36_v11 }
  0xb7   :  { %v38_v13 = vmul.f32 0.33333334, %v48_v12 }
  0xb9   :  { %v39_v14 = vmul.f32 1.442695, %v38_v13 }
  0xbb   :  { %52 = vpow2.f32 %v39_v14 }
  0xc5   :  { %v53_v15 = vpop.eup %52 }
  0xc6   :  { %42 = vst.msk [vmem:[%s111_s2] sm:$0xff] %vm41_vm0, %v53_v15 }
  0xc7   :  { %47 = vsyncpa [#allocation4], 1 }

</bundles_post_ra>
